<compile_context>
chip_gen: v6e
topology: v6e:2x2x1
jax: 0.10.0
libtpu: 0.0.40
codegen_flags: <defaults>
</compile_context>

<pallas_src>
import functools

import jax
import jax.numpy as jnp
from jax.experimental import pallas as pl
from jax.experimental.pallas import tpu as pltpu


# ----------------------------------------------------------------------------
# Pallas kernel: per-row softmax cross-entropy with integer class targets.
#   loss[r] = logsumexp(logits[r, :]) - logits[r, target[r]]
# One grid step handles one (stack, row-tile) pair.
# ----------------------------------------------------------------------------
def _ce_rows_kernel(logits_ref, tgt_ref, loss_ref):
    # logits_ref: (1, TILE_R, C) native dtype; tgt_ref: (TILE_R, 1) int32
    # loss_ref:   (1, TILE_R, 1) f32
    logits = logits_ref[0].astype(jnp.float32)            # upcast after VMEM load
    t = tgt_ref[...]                                       # (TILE_R, 1) int32
    tr, c = logits.shape

    # numerically-stable log-sum-exp per row
    m = jnp.max(logits, axis=1, keepdims=True)             # (TILE_R, 1)
    centered = logits - m
    s = jnp.sum(jnp.exp(centered), axis=1, keepdims=True)  # (TILE_R, 1)

    # gather centered[r, target[r]] via a lane-index mask (no dynamic gather on TPU)
    cols = jax.lax.broadcasted_iota(jnp.int32, (tr, c), 1)
    picked_centered = jnp.sum(
        jnp.where(cols == t, centered, 0.0), axis=1, keepdims=True)

    # loss = (m + log s) - (picked_centered + m) = log s - picked_centered
    loss_ref[0] = jnp.log(s) - picked_centered


def _pick_tile_r(num_rows, num_cols, itemsize):
    """Row-tile size: multiple of 8, <= 256, <= ~4 MiB per buffer (fits the 16 MiB
    scoped-VMEM default on v5e even with double-buffering and f32 inputs)."""
    budget_rows = max(8, (4 * 1024 * 1024) // max(1, num_cols * itemsize))
    tile_r = min(256, budget_rows, pl.cdiv(num_rows, 8) * 8)
    return max(8, (tile_r // 8) * 8)


def cross_entropy_stacked_pallas(logits_stacked, targets):
    """logits_stacked: (S, R, C) float, targets: (R,) int -> (S,) f32 mean CE."""
    S, R, C = logits_stacked.shape
    itemsize = jnp.dtype(logits_stacked.dtype).itemsize
    tile_r = _pick_tile_r(R, C, itemsize)
    r_pad = pl.cdiv(R, tile_r) * tile_r
    num_tiles = r_pad // tile_r

    if r_pad != R:
        # zero-padded rows produce a finite loss (log C) and are sliced off below
        logits_stacked = jnp.pad(
            logits_stacked, ((0, 0), (0, r_pad - R), (0, 0)))
        targets = jnp.pad(targets, (0, r_pad - R))
    tgt2d = targets.reshape(r_pad, 1).astype(jnp.int32)

    per_row = pl.pallas_call(
        _ce_rows_kernel,
        out_shape=jax.ShapeDtypeStruct((S, r_pad, 1), jnp.float32),
        grid_spec=pltpu.PrefetchScalarGridSpec(
            num_scalar_prefetch=0,
            grid=(S, num_tiles),
            in_specs=[
                pl.BlockSpec((1, tile_r, C), lambda s, i: (s, i, 0)),
                pl.BlockSpec((tile_r, 1), lambda s, i: (i, 0)),
            ],
            out_specs=pl.BlockSpec((1, tile_r, 1), lambda s, i: (s, i, 0)),
        ),
        compiler_params=pltpu.CompilerParams(
            dimension_semantics=("parallel", "parallel")),
    )(logits_stacked, tgt2d)

    # reduction='mean' over the true (unpadded) rows, one loss per stack
    return jnp.sum(per_row[:, :R, 0], axis=1) / R


# ----------------------------------------------------------------------------
# Glue: torchvision-style keypoints_to_heatmap (index generation) in plain JAX.
# ----------------------------------------------------------------------------
def keypoints_to_heatmap_jax(keypoints, rois, heatmap_size):
    """keypoints: (M, K, 3), rois: (M, 4) -> (heatmap indices, valid), both int32."""
    offset_x = rois[:, 0][:, None]
    offset_y = rois[:, 1][:, None]
    scale_x = (heatmap_size / (rois[:, 2] - rois[:, 0]))[:, None]
    scale_y = (heatmap_size / (rois[:, 3] - rois[:, 1]))[:, None]

    x = keypoints[..., 0]
    y = keypoints[..., 1]
    x_boundary = x == rois[:, 2][:, None]
    y_boundary = y == rois[:, 3][:, None]

    xi = jnp.floor((x - offset_x) * scale_x).astype(jnp.int32)
    yi = jnp.floor((y - offset_y) * scale_y).astype(jnp.int32)
    xi = jnp.where(x_boundary, heatmap_size - 1, xi)
    yi = jnp.where(y_boundary, heatmap_size - 1, yi)

    valid_loc = (xi >= 0) & (yi >= 0) & (xi < heatmap_size) & (yi < heatmap_size)
    vis = keypoints[..., 2] > 0
    valid = (valid_loc & vis).astype(jnp.int32)

    lin_ind = yi * heatmap_size + xi
    heatmaps = lin_ind * valid
    return heatmaps, valid


class CrossEntropyHeatmapLossJax:
    """JAX/Pallas port of CrossEntropyHeatmapLoss.forward (list-of-stacks path)."""

    def __init__(self, num_keypoints, dest_size=64, imsize=256):
        self.num_keypoints = num_keypoints
        self.dest_size = float(dest_size)
        self.imsize = imsize

    def __call__(self, hm_preds, targets):
        S = len(hm_preds)
        N, K, H, W = hm_preds[0].shape
        roi = jnp.asarray([[0.0, 0.0, self.dest_size, self.dest_size]],
                          dtype=jnp.float32)

        heatmaps = []
        for target in targets:
            kps = target['keypoints']  # (1, K, 3)
            # TODO(synk): the original forward passes the undefined name `imsize`
            # as heatmap_size; we use the real heatmap width H so CE targets are
            # valid class indices in [0, H*W).
            # TODO(synk): the reference discards `valid` too (invisible keypoints
            # get target 0 and still contribute to the mean); kept for parity.
            hm_per_image, _valid = keypoints_to_heatmap_jax(kps, roi, H)
            heatmaps.append(hm_per_image.reshape(-1))
        keypoint_targets = jnp.concatenate(heatmaps, axis=0)   # (N*K,)

        # Fuse all S stacks into one pallas_call: (S, N*K, H*W), native dtype
        # (no f32 upcast in the wrapper -- the kernel upcasts after the VMEM load).
        logits_stacked = jnp.stack(
            [p.reshape(N * K, H * W) for p in hm_preds], axis=0)
        losses = cross_entropy_stacked_pallas(logits_stacked, keypoint_targets)

        return {f'hmloss_{i}': losses[i] for i in range(S)}


if __name__ == "__main__":
    key = jax.random.PRNGKey(0)
    N, K, H, W = 2, 4, 16, 16
    S = 2
    dest_size = 64.0

    k_pred, k_x, k_y = jax.random.split(key, 3)

    # list of S heatmap predictions, each NCHW = (N, K, H, W)
    hm_preds = [
        jax.random.normal(jax.random.fold_in(k_pred, i), (N, K, H, W),
                          dtype=jnp.float32)
        for i in range(S)
    ]

    # per-image keypoints: (1, K, 3) = (x, y, visibility) in [0, dest_size)
    kx = jax.random.uniform(k_x, (N, 1, K), minval=0.0, maxval=dest_size)
    ky = jax.random.uniform(k_y, (N, 1, K), minval=0.0, maxval=dest_size)
    vis = jnp.ones((N, 1, K), dtype=jnp.float32)
    keypoints = jnp.stack([kx, ky, vis], axis=-1)              # (N, 1, K, 3)
    targets = [{'keypoints': keypoints[i]} for i in range(N)]

    loss_module = CrossEntropyHeatmapLossJax(num_keypoints=K,
                                             dest_size=dest_size)
    loss_dict = loss_module(hm_preds, targets)
    for v in loss_dict.values():
        jax.block_until_ready(v)
    print("KERNEL_OK")
</pallas_src>

<mosaic_0001>
module attributes {stable_mosaic.version = 11 : i64} {
  func.func @_ce_rows_kernel(%arg0: i32, %arg1: i32, %arg2: memref<1x8x256xf32, #tpu.memory_space<vmem>>, %arg3: memref<8x1xi32, #tpu.memory_space<vmem>>, %arg4: memref<1x8x1xf32, #tpu.memory_space<vmem>>) attributes {dimension_semantics = [#tpu.dimension_semantics<parallel>, #tpu.dimension_semantics<parallel>], iteration_bounds = array<i64: 2, 1>, scalar_prefetch = 0 : i64, scratch_operands = 0 : i64, tpu.core_type = #tpu.core_type<tc>, window_params = [{transform_indices = @transform_0, window_bounds = array<i64: 1, 8, 256>}, {transform_indices = @transform_1, window_bounds = array<i64: 8, 1>}, {transform_indices = @transform_2, window_bounds = array<i64: 1, 8, 1>}]} {
    %c0 = arith.constant 0 : index
    %c0_0 = arith.constant 0 : index
    %c0_1 = arith.constant 0 : index
    %0 = vector.load %arg2[%c0, %c0_0, %c0_1] : memref<1x8x256xf32, #tpu.memory_space<vmem>>, vector<1x8x256xf32>
    %1 = vector.shape_cast %0 : vector<1x8x256xf32> to vector<8x256xf32>
    %c0_2 = arith.constant 0 : index
    %c0_3 = arith.constant 0 : index
    %2 = vector.load %arg3[%c0_2, %c0_3] : memref<8x1xi32, #tpu.memory_space<vmem>>, vector<8x1xi32>
    %cst = arith.constant dense<0xFF800000> : vector<8xf32>
    %3 = vector.multi_reduction <maximumf>, %1, %cst [1] : vector<8x256xf32> to vector<8xf32>
    %4 = vector.shape_cast %3 : vector<8xf32> to vector<8x1xf32>
    %5 = vector.broadcast %4 : vector<8x1xf32> to vector<8x256xf32>
    %6 = arith.subf %1, %5 : vector<8x256xf32>
    %7 = math.exp %6 : vector<8x256xf32>
    %cst_4 = arith.constant dense<0.000000e+00> : vector<8xf32>
    %8 = vector.multi_reduction <add>, %7, %cst_4 [1] : vector<8x256xf32> to vector<8xf32>
    %9 = vector.shape_cast %8 : vector<8xf32> to vector<8x1xf32>
    %10 = tpu.iota {dimensions = array<i32: 1>} : vector<8x256xi32>
    %11 = vector.broadcast %2 : vector<8x1xi32> to vector<8x256xi32>
    %12 = arith.cmpi eq, %10, %11 : vector<8x256xi32>
    %cst_5 = arith.constant 0.000000e+00 : f32
    %13 = vector.broadcast %cst_5 : f32 to vector<8x256xf32>
    %14 = arith.select %12, %6, %13 : vector<8x256xi1>, vector<8x256xf32>
    %cst_6 = arith.constant dense<0.000000e+00> : vector<8xf32>
    %15 = vector.multi_reduction <add>, %14, %cst_6 [1] : vector<8x256xf32> to vector<8xf32>
    %16 = vector.shape_cast %15 : vector<8xf32> to vector<8x1xf32>
    %17 = math.log %9 : vector<8x1xf32>
    %18 = arith.subf %17, %16 : vector<8x1xf32>
    %c0_7 = arith.constant 0 : index
    %c0_8 = arith.constant 0 : index
    %c0_9 = arith.constant 0 : index
    %19 = vector.load %arg4[%c0_7, %c0_8, %c0_9] : memref<1x8x1xf32, #tpu.memory_space<vmem>>, vector<1x8x1xf32>
    %20 = vector.shape_cast %19 : vector<1x8x1xf32> to vector<8x1xf32>
    %21 = vector.shape_cast %18 : vector<8x1xf32> to vector<1x8x1xf32>
    tpu.vector_store %arg4[%c0_7, %c0_8, %c0_9], %21 {strides = array<i32>} : memref<1x8x1xf32, #tpu.memory_space<vmem>>, vector<1x8x1xf32>,
    return
  }
  func.func @transform_0(%arg0: i32, %arg1: i32) -> (i32, i32, i32) {
    %c0_i32 = arith.constant 0 : i32
    %c0_i32_0 = arith.constant 0 : i32
    return %arg0, %arg1, %c0_i32 : i32, i32, i32
  }
  func.func @transform_1(%arg0: i32, %arg1: i32) -> (i32, i32) {
    %c0_i32 = arith.constant 0 : i32
    %c0_i32_0 = arith.constant 0 : i32
    return %arg1, %c0_i32 : i32, i32
  }
  func.func @transform_2(%arg0: i32, %arg1: i32) -> (i32, i32, i32) {
    %c0_i32 = arith.constant 0 : i32
    %c0_i32_0 = arith.constant 0 : i32
    return %arg0, %arg1, %c0_i32 : i32, i32, i32
  }
}

</mosaic_0001>

<bundles_post_ra>
// kernel: tpu_custom_call.1
= control target key start
LH: loop header
LB: loop body
LE: loop exit
PB: predicated region body
PF: predicated region fallthrough
CT: control target
= control target key end

     0   :  { %7 = vsyncpa [#allocation3], 0  ;;  %s612_s0 = inlined_call_operand.hbm [shape: f32[2,8,256], index: 0, kind: input, shape index: {}]   ;;  %s613_s1 = inlined_call_operand.vmem [shape: s32[8,1], index: 1, kind: input, shape index: {}]   ;;  %s614_s2 = inlined_call_operand.vmem [shape: f32[2,8,1], index: 2, kind: output, shape index: {}]  }
   0x1   :  { %9 = vsyncpa [#allocation3 + $0x1], 0  ;;  %s509_s9 = smov 0   ;;  %s511_s10 = smov 0  }
   0x2   :  { %s513_s11 = smov 0   ;;  %s515_s12 = smov 0  }
   0x3   :  { %s517_s13 = smov 0   ;;  %s519_s14 = smov 0  }
   0x4 LB: > { %s335_s15 = sadd.s32 4294967295, %s490_s14   ;;  %s27_s16 = sadd.s32 1, %s486_s13  ;;  %s490_s14 = sphi %s519_s14, %s15_s14   ;;  %s486_s13 = sphi %s517_s13, %s622_s13   ;;  %s482_s12 = sphi %s515_s12, %s621_s12   ;;  %s478_s11 = sphi %s513_s11, %s620_s11   ;;  %s474_s10 = sphi %s511_s10, %s619_s10   ;;  %s470_s9 = sphi %s509_s9, %s618_s9  }
   0x5   : > { %p29_p0 = scmp.ge.s32.totalorder %s27_s16, 2  ;;  %s36_s17 = sadd.s32 1, %s478_s11 }
   0x6   : > { %p43_p1 = scmp.ne.s32.totalorder %s478_s11, %s474_s10  ;;  %p44_p2 = scmp.eq.s32.totalorder %s490_s14, 0 }
   0x7   : > { %s624_s16 = smov (%p29_p0, %s27_s16), 0  ;;  %p49_p4 = scmp.ne.s32.totalorder %s474_s10, %s470_s9 }
   0x8   : > { %p545_p3 = por %p44_p2, %p43_p1  ;;  %s31_s19 = ssub.s32 %s486_s13, %s624_s16 }
   0x9   : > { %p50_p5 = scmp.eq.s32.totalorder %s335_s15, 0  ;;  %p34_p6 = scmp.eq.s32.totalorder %s31_s19, 0 }
   0xa   : > { %p355_p8 = scmp.lt.s32.totalorder %s490_s14, 2  ;;  %s134_s22 = sand.u32 1, %s478_s11  }
   0xb   : > { %p552_p7 = por %p50_p5, %p49_p4  ;;  %s348_s23 = sshll.u32 %s486_s13, 8 }
   0xc   : > { %s558_s21 = scalar_select %p34_p6, %s478_s11, %s36_s17  }
   0xd   : > { %s340_s24 = sshll.u32 %s134_s22, 4  ;;  %s146_s27 = scalar_lea.hbm %s612_s0, %s348_s23 }
   0xe   : > { %s138_s28 = scalar_lea.vmem [#allocation2], %s340_s24  ;;  %p567_p9 = pnand %p355_p8, %p545_p3 }
   0xf   : > { %s148_s29 = sshll.u32 %s138_s28, 4  ;;  %p343_p10 = scmp.ge.s32.totalorder %s490_s14, 1  ;;  %s149_s29 = int_to_ptr.vmem [resolvable:$true] %s148_s29 }
  0x10   : > { %p153_p11 = scmp.lt.s32.totalorder %s490_s14, 3  ;;  %s135_s3 = scalar_lea.sflag [#allocation3], %s134_s22 }
  0x11   : > { %p414_p12 = pneg %p567_p9  ;;  %s425_s4 = scalar_lea.vmem %s149_s29, 256 }
  0x12   : > { %p426_p13 = scmp.ne.s32.totalorder %s149_s29, %s425_s4  ;;  %s492_s5 = smov [#allocation2]  }
  0x13   : > { %s430_s6 = sshll.u32 %s492_s5, 4  ;;  %s431_s6 = int_to_ptr.vmem [resolvable:$false] %s430_s6 }
  0x14   : > { %p428_p0 = pnand %p426_p13, %p414_p12  ;;  %s432_s7 = scalar_lea.vmem %s431_s6, 512 }
  0x15   : > { %p433_p2 = scmp.lt.s32.totalorder %s149_s29, %s431_s6  ;;  %p434_p3 = scmp.lt.s32.totalorder %s432_s7, %s425_s4 }
  0x16   : > { %p429_p1 = pneg %p428_p0 }
  0x17   : > { %p435_p4 = por %p434_p3, %p433_p2 }
  0x19   : > { %p436_p5 = pnand %p435_p4, %p429_p1 }
  0x1b   : > { %439 = shalt.err (!%p436_p5)
}
  0x1c   : > { %354 = dma.hbm_to_vmem [thread:$0]  (!%p567_p9), %s146_s27, 256, %s149_s29, %s135_s3  }
  0x1d   : > { %p154_p6 = pnand %p343_p10, %p153_p11 }
  0x1e   : > { %s159_s8 = sand.u32 (!%p154_p6), 1, %s474_s10  }
  0x1f   : > { %157 = sbr.rel (%p154_p6) target bundleno = 356 (0x164), region = 28  ;;  %s344_s9 = sshll.u32 (!%p154_p6), %s159_s8, 4 }
  0x20   : > { %s160_s15 = scalar_lea.sflag (!%p154_p6), [#allocation3], %s159_s8  ;;  %s163_s17 = scalar_lea.vmem (!%p154_p6), [#allocation2], %s344_s9 }
  0x24   : > { %465 = dma.done.wait (%p552_p7), %s160_s15, 256  }
  0x25   : > { %467 = vsyncadd (%p552_p7), %s160_s15, 4294967040  ;;  %v493_v0 = vmov 0   ;;  %v201_v1 = vld [vmem:[%s163_s17] sm:$0xff]  ;;  %v202_v2 = vld [vmem:[%s163_s17 + $0x8] sm:$0xff]  ;;  %v216_v10 = vlaneseq  ;;  %p194_p7 = scmp.lt.s32.totalorder %s482_s12, 1  ;;  %vm232_vm2 = vcmask 7168  }
  0x26   : > { %405 = vset.pattern.permute.xlu0 %v493_v0  ;;  %v204_v3 = vmax.f32 %v201_v1, %v202_v2  ;;  %v203_v4 = vld [vmem:[%s613_s1] sm:$0xff] }
  0x27   : > { %v217_v11 = vand.u32 127, %v216_v10  ;;  %s626_s12 = smov (!%p194_p7, %s482_s12), 1 }
  0x28   : > { %205 = vmax.xlane.f32.xlu0 %v204_v3  ;;  %s345_s20 = sshll.u32 %s626_s12, 3 }
  0x29   : > { %v218_v12 = vadd.s32 128, %v217_v11  ;;  %s200_s24 = scalar_lea.vmem %s614_s2, %s345_s20 }
  0x3e   : > { %220 = vperm.xlu0 %405, %v203_v4  }
  0xb1   : > { %v206_v5 = vpop.xlane.xlu0 %205 }
  0xb2   : > { %v207_v6 = vsub.f32 %v201_v1, %v206_v5  ;;  %v208_v7 = vsub.f32 %v202_v2, %v206_v5 }
  0xb4   : > { %v209_v8 = vmul.f32 1.442695, %v207_v6  ;;  %v211_v9 = vmul.f32 1.442695, %v208_v7 }
  0xb6   : > { %406 = vpow2.f32 %v209_v8 }
  0xb7   : > { %408 = vpow2.f32 %v211_v9 }
  0xb9   : > { %v221_v13 = vpop.permute.xlu0 %220 }
  0xba   : > { %vm222_vm0 = vcmp.eq.s32.totalorder %v217_v11, %v221_v13  ;;  %vm223_vm1 = vcmp.eq.s32.totalorder %v218_v12, %v221_v13 }
  0xbb   : > { %v224_v17 = vsel %vm222_vm0, %v207_v6, 0.0  ;;  %v225_v18 = vsel %vm223_vm1, %v208_v7, 0.0 }
  0xbc   : > { %v226_v19 = vadd.f32 %v225_v18, %v224_v17 }
  0xc3   : > { %v407_v14 = vpop.eup %406 }
  0xc4   : > { %v409_v15 = vpop.eup %408 }
  0xc5   : > { %v213_v16 = vadd.f32 %v409_v15, %v407_v14 }
  0xc7   : > { %214 = vadd.xlane.f32.xlu1 %v213_v16 }
  0xcb   : > { %227 = vadd.xlane.f32.xlu1 %v226_v19 }
 0x150   : > { %v215_v20 = vpop.xlane.xlu1 %214 }
 0x151   : > { %410 = vlog2.f32 %v215_v20 }
 0x154   : > { %v228_v23 = vpop.xlane.xlu1 %227 }
 0x15e   : > { %v411_v21 = vpop.eup %410 }
 0x15f   : > { %v230_v22 = vmul.f32 0.6931472, %v411_v21 }
 0x161   : > { %v231_v24 = vsub.f32 %v230_v22, %v228_v23 }
 0x163   : > { %233 = vst.msk [vmem:[%s200_s24] sm:$0xff] %vm232_vm2, %v231_v24 }
 0x164 PF: > { %s15_s14 = sadd.s32 1, %s490_s14   ;;  %s618_s9 = smov %s474_s10 }
 0x165   : > { %p12_p8 = scmp.ge.s32.totalorder %s15_s14, 4   ;;  %s619_s10 = smov %s478_s11 }
 0x166   : > { %s620_s11 = smov %s558_s21  ;;  %s621_s12 = smov %s486_s13 }
 0x167   : > { %s622_s13 = smov %s624_s16  ;;  %14 = sbr.rel (!%p12_p8) target bundleno = 4 (0x4), region = 71 }
 0x16c   :  { %259 = vsyncpa [#allocation3], 1 }
 0x16d   :  { %261 = vsyncpa [#allocation3 + $0x1], 1 }

</bundles_post_ra>
